<compile_context>
chip_gen: v7x
topology: tpu7x:2x2x1
jax: 0.10.0
libtpu: 0.0.40
codegen_flags: <defaults>
</compile_context>

<pallas_src>
import jax
import jax.numpy as jnp
from jax.experimental import pallas as pl
from jax.experimental.pallas import tpu as pltpu


def policy_mlp_kernel(x_ref, w1_ref, w2_ref, w3_ref, b_ref, mean_ref):
    """One batch tile of the 3-layer MLP in lane-dense (transposed) orientation.

    Per grid step (features on sublanes, batch on the 128-lane axis):
      x_ref    : (S,  TB)        compute dtype (f32 or bf16)
      w1_ref   : (H1, S)         compute dtype
      w2_ref   : (H2, H1)        compute dtype
      w3_ref   : (A,  H2)        compute dtype
      b_ref    : (H1+H2+A, 1)    f32 (concatenated column biases)
      mean_ref : (A,  TB)        f32
    """
    h1 = w1_ref.shape[0]
    h2 = w2_ref.shape[0]
    a_dim = w3_ref.shape[0]

    # Static slices into the concatenated bias operand.
    b1 = b_ref[pl.ds(0, h1), :]                # (H1, 1)
    b2 = b_ref[pl.ds(h1, h2), :]               # (H2, 1)
    b3 = b_ref[pl.ds(h1 + h2, a_dim), :]       # (A, 1)

    x = x_ref[...]                             # (S, TB)

    # Layer 1: Linear + ReLU (MXU matmul, f32 accumulation; bias lane-broadcast).
    z1 = jnp.dot(w1_ref[...], x, preferred_element_type=jnp.float32) + b1
    a1 = jnp.maximum(z1, 0.0).astype(w2_ref.dtype)

    # Layer 2: Linear + ReLU.
    z2 = jnp.dot(w2_ref[...], a1, preferred_element_type=jnp.float32) + b2
    a2 = jnp.maximum(z2, 0.0).astype(w3_ref.dtype)

    # Output layer: Linear -> mean (transposed: (A, TB), lane-dense store).
    mean_t = jnp.dot(w3_ref[...], a2, preferred_element_type=jnp.float32) + b3
    mean_ref[...] = mean_t.astype(mean_ref.dtype)


def policy_forward(state, params, *, tile_b=512, compute_dtype=jnp.float32):
    """Run the policy MLP on TPU via a batch-tiled Pallas kernel.

    state : (batch, state_dim) float32
    params: dict with w1,b1,w2,b2,w3,b3 (weights (in,out), biases (1,out))
            and log_std (1, action_dim)
    Returns (mean, std), each (batch, action_dim) float32.
    """
    batch, state_dim = state.shape
    h1 = params["w1"].shape[1]
    h2 = params["w2"].shape[1]
    act = params["w3"].shape[1]

    # Lane-dense ("transposed") orientation: batch sits on the 128-lane axis.
    # Wrapper-side transposes are layout plumbing on tiny arrays.
    x_t = state.T.astype(compute_dtype)                       # (S,  B)
    w1_t = params["w1"].T.astype(compute_dtype)               # (H1, S)
    w2_t = params["w2"].T.astype(compute_dtype)               # (H2, H1)
    w3_t = params["w3"].T.astype(compute_dtype)               # (A,  H2)
    b_cat = jnp.concatenate(
        [params["b1"].reshape(-1),
         params["b2"].reshape(-1),
         params["b3"].reshape(-1)]).astype(jnp.float32)[:, None]  # (H1+H2+A, 1)

    # Batch tile: large enough to amortize per-step overhead, equal to the full
    # batch when the batch is small (block == full dim is always legal).
    tb = tile_b if batch >= tile_b else batch
    grid = (pl.cdiv(batch, tb),)

    mean_t = pl.pallas_call(
        policy_mlp_kernel,
        out_shape=jax.ShapeDtypeStruct((act, batch), jnp.float32),
        grid=grid,
        in_specs=[
            # Only the state tile moves with the grid index.
            pl.BlockSpec((state_dim, tb), lambda i: (0, i)),
            # Weights / biases: constant block index -> stay resident in VMEM.
            pl.BlockSpec((h1, state_dim), lambda i: (0, 0)),
            pl.BlockSpec((h2, h1), lambda i: (0, 0)),
            pl.BlockSpec((act, h2), lambda i: (0, 0)),
            pl.BlockSpec((h1 + h2 + act, 1), lambda i: (0, 0)),
        ],
        out_specs=pl.BlockSpec((act, tb), lambda i: (0, i)),
        compiler_params=pltpu.CompilerParams(
            dimension_semantics=("parallel",)),
    )(x_t, w1_t, w2_t, w3_t, b_cat)

    mean = mean_t.T                                           # (B, A)
    # std = exp(log_std) is batch-independent: computed once outside the kernel.
    std = jnp.broadcast_to(jnp.exp(params["log_std"]).reshape(1, act),
                           mean.shape)
    return mean, std


def init_params(key, state_dim, action_dim, hidden_layers=(64, 64)):
    """Deterministic parameter init (uniform, like PyTorch Linear default)."""
    dims = [state_dim, *hidden_layers, action_dim]
    params = {}
    for idx in range(len(dims) - 1):
        fan_in, fan_out = dims[idx], dims[idx + 1]
        key, kw, kb = jax.random.split(key, 3)
        bound = 1.0 / jnp.sqrt(fan_in)
        params[f"w{idx + 1}"] = jax.random.uniform(
            kw, (fan_in, fan_out), jnp.float32, minval=-bound, maxval=bound)
        params[f"b{idx + 1}"] = jax.random.uniform(
            kb, (1, fan_out), jnp.float32, minval=-bound, maxval=bound)
    # nn.Parameter(torch.zeros(action_dim))
    params["log_std"] = jnp.zeros((1, action_dim), jnp.float32)
    return params


def policy_forward_ref(state, p):
    """Pure-JAX reference for correctness check."""
    h1 = jnp.maximum(state @ p["w1"] + p["b1"], 0.0)
    h2 = jnp.maximum(h1 @ p["w2"] + p["b2"], 0.0)
    mean = h2 @ p["w3"] + p["b3"]
    std = jnp.broadcast_to(jnp.exp(p["log_std"]), mean.shape)
    return mean, std


if __name__ == "__main__":
    key = jax.random.PRNGKey(0)
    state_dim, action_dim = 16, 4

    key, k_params = jax.random.split(key)
    params = init_params(k_params, state_dim, action_dim, hidden_layers=(64, 64))

    # --- Small batch: single grid step (block == full batch dim). ---
    key, k_s = jax.random.split(key)
    state_small = jax.random.normal(k_s, (8, state_dim), jnp.float32)
    mean, std = policy_forward(state_small, params)
    jax.block_until_ready((mean, std))
    mean_r, std_r = policy_forward_ref(state_small, params)
    assert mean.shape == (8, action_dim) and std.shape == (8, action_dim)
    assert jnp.allclose(mean, mean_r, atol=1e-5, rtol=1e-5)
    assert jnp.allclose(std, std_r, atol=1e-6, rtol=1e-6)

    # --- Larger batch, not a multiple of the tile: exercises grid + padding. ---
    key, k_b = jax.random.split(key)
    state_big = jax.random.normal(k_b, (200, state_dim), jnp.float32)
    mean_b, std_b = policy_forward(state_big, params, tile_b=128)
    jax.block_until_ready((mean_b, std_b))
    mean_br, std_br = policy_forward_ref(state_big, params)
    assert mean_b.shape == (200, action_dim)
    assert jnp.allclose(mean_b, mean_br, atol=1e-5, rtol=1e-5)
    assert jnp.allclose(std_b, std_br, atol=1e-6, rtol=1e-6)

    # --- bf16 compute path (v6e/v7x bandwidth optimization), f32 accumulation. ---
    mean_bf, _ = policy_forward(state_big, params, tile_b=128,
                                compute_dtype=jnp.bfloat16)
    jax.block_until_ready(mean_bf)
    assert jnp.allclose(mean_bf, mean_br, atol=5e-2, rtol=5e-2)

    print("KERNEL_OK")
</pallas_src>

<mosaic_0001>
module attributes {stable_mosaic.version = 11 : i64} {
  func.func @policy_mlp_kernel(%arg0: i32, %arg1: memref<16x8xf32, #tpu.memory_space<vmem>>, %arg2: memref<64x16xf32, #tpu.memory_space<vmem>>, %arg3: memref<64x64xf32, #tpu.memory_space<vmem>>, %arg4: memref<4x64xf32, #tpu.memory_space<vmem>>, %arg5: memref<132x1xf32, #tpu.memory_space<vmem>>, %arg6: memref<4x8xf32, #tpu.memory_space<vmem>>) attributes {dimension_semantics = [#tpu.dimension_semantics<parallel>], iteration_bounds = array<i64: 1>, scalar_prefetch = 0 : i64, scratch_operands = 0 : i64, tpu.core_type = #tpu.core_type<tc>, window_params = [{transform_indices = @transform_0, window_bounds = array<i64: 16, 8>}, {pipeline_mode = #tpu.pipeline_mode<synchronous>, transform_indices = @transform_1, window_bounds = array<i64: 64, 16>}, {pipeline_mode = #tpu.pipeline_mode<synchronous>, transform_indices = @transform_2, window_bounds = array<i64: 64, 64>}, {pipeline_mode = #tpu.pipeline_mode<synchronous>, transform_indices = @transform_3, window_bounds = array<i64: 4, 64>}, {pipeline_mode = #tpu.pipeline_mode<synchronous>, transform_indices = @transform_4, window_bounds = array<i64: 132, 1>}, {transform_indices = @transform_5, window_bounds = array<i64: 4, 8>}]} {
    %c0 = arith.constant 0 : index
    %c0_0 = arith.constant 0 : index
    %0 = vector.load %arg5[%c0, %c0_0] : memref<132x1xf32, #tpu.memory_space<vmem>>, vector<64x1xf32>
    %c64 = arith.constant 64 : index
    %c0_1 = arith.constant 0 : index
    %1 = vector.load %arg5[%c64, %c0_1] : memref<132x1xf32, #tpu.memory_space<vmem>>, vector<64x1xf32>
    %c128 = arith.constant 128 : index
    %c0_2 = arith.constant 0 : index
    %2 = vector.load %arg5[%c128, %c0_2] : memref<132x1xf32, #tpu.memory_space<vmem>>, vector<4x1xf32>
    %c0_3 = arith.constant 0 : index
    %c0_4 = arith.constant 0 : index
    %3 = vector.load %arg1[%c0_3, %c0_4] : memref<16x8xf32, #tpu.memory_space<vmem>>, vector<16x8xf32>
    %c0_5 = arith.constant 0 : index
    %c0_6 = arith.constant 0 : index
    %4 = vector.load %arg2[%c0_5, %c0_6] : memref<64x16xf32, #tpu.memory_space<vmem>>, vector<64x16xf32>
    %cst = arith.constant dense<0.000000e+00> : vector<64x8xf32>
    %5 = tpu.matmul %4, %3, %cst {dimension_numbers = #tpu.dot_dimension_numbers<[1], [0], [0], [1], [0, 0, 1, 1], [], []>} : vector<64x16xf32>, vector<16x8xf32>, vector<64x8xf32> -> vector<64x8xf32>
    %6 = vector.broadcast %0 : vector<64x1xf32> to vector<64x8xf32>
    %7 = arith.addf %5, %6 : vector<64x8xf32>
    %cst_7 = arith.constant 0.000000e+00 : f32
    %8 = vector.broadcast %cst_7 : f32 to vector<64x8xf32>
    %9 = arith.maximumf %7, %8 : vector<64x8xf32>
    %c0_8 = arith.constant 0 : index
    %c0_9 = arith.constant 0 : index
    %10 = vector.load %arg3[%c0_8, %c0_9] : memref<64x64xf32, #tpu.memory_space<vmem>>, vector<64x64xf32>
    %cst_10 = arith.constant dense<0.000000e+00> : vector<64x8xf32>
    %11 = tpu.matmul %10, %9, %cst_10 {dimension_numbers = #tpu.dot_dimension_numbers<[1], [0], [0], [1], [0, 0, 1, 1], [], []>} : vector<64x64xf32>, vector<64x8xf32>, vector<64x8xf32> -> vector<64x8xf32>
    %12 = vector.broadcast %1 : vector<64x1xf32> to vector<64x8xf32>
    %13 = arith.addf %11, %12 : vector<64x8xf32>
    %cst_11 = arith.constant 0.000000e+00 : f32
    %14 = vector.broadcast %cst_11 : f32 to vector<64x8xf32>
    %15 = arith.maximumf %13, %14 : vector<64x8xf32>
    %c0_12 = arith.constant 0 : index
    %c0_13 = arith.constant 0 : index
    %16 = vector.load %arg4[%c0_12, %c0_13] : memref<4x64xf32, #tpu.memory_space<vmem>>, vector<4x64xf32>
    %cst_14 = arith.constant dense<0.000000e+00> : vector<4x8xf32>
    %17 = tpu.matmul %16, %15, %cst_14 {dimension_numbers = #tpu.dot_dimension_numbers<[1], [0], [0], [1], [0, 0, 1, 1], [], []>} : vector<4x64xf32>, vector<64x8xf32>, vector<4x8xf32> -> vector<4x8xf32>
    %18 = vector.broadcast %2 : vector<4x1xf32> to vector<4x8xf32>
    %19 = arith.addf %17, %18 : vector<4x8xf32>
    %c0_15 = arith.constant 0 : index
    %c0_16 = arith.constant 0 : index
    %20 = vector.load %arg6[%c0_15, %c0_16] : memref<4x8xf32, #tpu.memory_space<vmem>>, vector<4x8xf32>
    tpu.vector_store %arg6[%c0_15, %c0_16], %19 {strides = array<i32>} : memref<4x8xf32, #tpu.memory_space<vmem>>, vector<4x8xf32>,
    return
  }
  func.func @transform_0(%arg0: i32) -> (i32, i32) {
    %c0_i32 = arith.constant 0 : i32
    %c0_i32_0 = arith.constant 0 : i32
    return %c0_i32, %arg0 : i32, i32
  }
  func.func @transform_1(%arg0: i32) -> (i32, i32) {
    %c0_i32 = arith.constant 0 : i32
    %c0_i32_0 = arith.constant 0 : i32
    %c0_i32_1 = arith.constant 0 : i32
    return %c0_i32, %c0_i32_0 : i32, i32
  }
  func.func @transform_2(%arg0: i32) -> (i32, i32) {
    %c0_i32 = arith.constant 0 : i32
    %c0_i32_0 = arith.constant 0 : i32
    %c0_i32_1 = arith.constant 0 : i32
    return %c0_i32, %c0_i32_0 : i32, i32
  }
  func.func @transform_3(%arg0: i32) -> (i32, i32) {
    %c0_i32 = arith.constant 0 : i32
    %c0_i32_0 = arith.constant 0 : i32
    %c0_i32_1 = arith.constant 0 : i32
    return %c0_i32, %c0_i32_0 : i32, i32
  }
  func.func @transform_4(%arg0: i32) -> (i32, i32) {
    %c0_i32 = arith.constant 0 : i32
    %c0_i32_0 = arith.constant 0 : i32
    %c0_i32_1 = arith.constant 0 : i32
    return %c0_i32, %c0_i32_0 : i32, i32
  }
  func.func @transform_5(%arg0: i32) -> (i32, i32) {
    %c0_i32 = arith.constant 0 : i32
    %c0_i32_0 = arith.constant 0 : i32
    return %c0_i32, %arg0 : i32, i32
  }
}

</mosaic_0001>

<bundles_post_ra>
// kernel: tpu_custom_call.1
= control target key start
LH: loop header
LB: loop body
LE: loop exit
PB: predicated region body
PF: predicated region fallthrough
CT: control target
= control target key end

     0   :  { %vm88_vm0 = vcmask 130048   ;;  %v685_v4 = vmov 0   ;;  %s857_s0 = inlined_call_operand.vmem [shape: f32[16,8], index: 0, kind: input, shape index: {}]   ;;  %s858_s1 = inlined_call_operand.vmem [shape: f32[64,16], index: 1, kind: input, shape index: {}]   ;;  %s859_s2 = inlined_call_operand.vmem [shape: f32[64,64], index: 2, kind: input, shape index: {}]   ;;  %s860_s3 = inlined_call_operand.vmem [shape: f32[4,64], index: 3, kind: input, shape index: {}]   ;;  %s861_s4 = inlined_call_operand.vmem [shape: f32[132,1], index: 4, kind: input, shape index: {}]   ;;  %s862_s5 = inlined_call_operand.hbm [shape: f32[4,8], index: 5, kind: output, shape index: {}]  }
   0x1   :  { %v38_v0 = vld [vmem:[%s857_s0] sm:$0xff]  ;;  %v39_v1 = vld [vmem:[%s857_s0 + $0x8] sm:$0xff]  ;;  %659 = vset.pattern.permute.xlu0 %v685_v4  ;;  %660 = vset.pattern.permute.xlu1 %v685_v4  ;;  %v23_v7 = vld [vmem:[%s861_s4 + $0x10] sm:$0xff] }
   0x2   :  { %v40_v2 = vld [vmem:[%s858_s1] sm:$0xff]  ;;  %v622_v3 = vpack.c.bf16 %v39_v1, %v38_v0  ;;  %v41_v6 = vld [vmem:[%s858_s1 + $0x8] sm:$0xff]  ;;  %v42_v8 = vld [vmem:[%s858_s1 + $0x10] sm:$0xff]  ;;  %60 = vperm.xlu1 %660, %v23_v7  }
   0x3   :  { %563 = vmatprep.mubr.msk.f32.mxu0 %vm88_vm0, %v40_v2  ;;  %v21_v5 = vld [vmem:[%s861_s4] sm:$0xff]  ;;  %v22_v9 = vld [vmem:[%s861_s4 + $0x8] sm:$0xff]  ;;  %v24_v10 = vld [vmem:[%s861_s4 + $0x18] sm:$0xff] }
   0x4   :  { %623 = vmatprep.subr.bf16.mxu0 %v622_v3  ;;  %50 = vperm.xlu0 %659, %v21_v5   ;;  %v43_v11 = vld [vmem:[%s858_s1 + $0x18] sm:$0xff]  ;;  %v44_v12 = vld [vmem:[%s858_s1 + $0x20] sm:$0xff] }
   0x5   :  { %625 = vmatpush3.bf16.msra.mxu0 %v622_v3  ;;  %v25_v13 = vld [vmem:[%s861_s4 + $0x20] sm:$0xff] }
   0x6   :  { %65 = vperm.xlu1 %660, %v24_v10  }
   0x8   :  { %564 = vmatmul.mubr.msk.f32.vlgmr.msra.gmra.mrb[0].mxu0 %vm88_vm0, %v41_v6  ;;  %55 = vperm.xlu0 %659, %v22_v9  }
   0x9   :  { %566 = vmatprep.mubr.msk.f32.mxu0 %vm88_vm0, %v42_v8 }
   0xa   :  { %10 = vsyncpa [#allocation3], 0  ;;  %v26_v14 = vld [vmem:[%s861_s4 + $0x28] sm:$0xff]  ;;  %v46_v16 = vld [vmem:[%s858_s1 + $0x30] sm:$0xff]  ;;  %vm274_vm1 = vcmask 523264   ;;  %v686_v9 = vmov 0.0|0.0  }
   0xb   :  { %v45_v15 = vld [vmem:[%s858_s1 + $0x28] sm:$0xff]  ;;  %v27_v17 = vld [vmem:[%s861_s4 + $0x30] sm:$0xff]  ;;  %75 = vperm.xlu1 %660, %v26_v14   ;;  %v28_v18 = vld [vmem:[%s861_s4 + $0x38] sm:$0xff]  ;;  %642 = vmatprep.subr.bf16.mxu0 %v686_v9  ;;  %vm687_vm2 = vmmov 0   ;;  %v688_v10 = vmov 0.0   ;;  %vm491_vm3 = vcmask 60416  }
   0xc   :  { %567 = vmatmul.mubr.msk.f32.gmra.mrb[2].mxu0 %vm88_vm0, %v43_v11  ;;  %70 = vperm.xlu0 %659, %v25_v13   ;;  %v47_v19 = vld [vmem:[%s858_s1 + $0x38] sm:$0xff]  ;;  %v29_v20 = vld [vmem:[%s861_s4 + $0x40] sm:$0xff]  ;;  %v30_v21 = vld [vmem:[%s861_s4 + $0x48] sm:$0xff]  ;;  %s689_s1 = smov [#allocation2]  }
   0xd   :  { %569 = vmatprep.mubr.msk.f32.mxu0 %vm88_vm0, %v44_v12  ;;  %v31_v22 = vld [vmem:[%s861_s4 + $0x50] sm:$0xff]  ;;  %v32_v23 = vld [vmem:[%s861_s4 + $0x58] sm:$0xff]  ;;  %v33_v24 = vld [vmem:[%s861_s4 + $0x60] sm:$0xff]  ;;  %s499_s9 = sshll.u32 %s689_s1, 4  ;;  %s500_s9 = int_to_ptr.vmem [resolvable:$true] %s499_s9 }
   0xe   :  { %v34_v25 = vld [vmem:[%s861_s4 + $0x68] sm:$0xff]  ;;  %v35_v26 = vld [vmem:[%s861_s4 + $0x70] sm:$0xff]  ;;  %v36_v27 = vld [vmem:[%s861_s4 + $0x78] sm:$0xff]  ;;  %s661_s10 = scalar_lea.vmem %s500_s9, 64  ;;  %p666_p1 = scmp.lt.s32.totalorder %s500_s9, %s500_s9 }
   0xf   :  { %85 = vperm.xlu1 %660, %v28_v18   ;;  %v37_v28 = vld [vmem:[%s861_s4 + $0x80] sm:$0xf]  ;;  %v227_v2 = vld [vmem:[%s859_s2 + $0x8] sm:$0xff]  ;;  %v228_v3 = vld [vmem:[%s859_s2 + $0x10] sm:$0xff]  ;;  %p662_p0 = scmp.ne.s32.totalorder %s500_s9, %s661_s10  ;;  %p667_p2 = scmp.lt.s32.totalorder %s661_s10, %s661_s10 }
  0x10   :  { %570 = vmatmul.mubr.msk.f32.gmra.mrb[4].mxu0 %vm88_vm0, %v45_v15  ;;  %80 = vperm.xlu0 %659, %v27_v17   ;;  %v226_v29 = vld [vmem:[%s859_s2] sm:$0xff]  ;;  %v229_v4 = vld [vmem:[%s859_s2 + $0x18] sm:$0xff]  ;;  %v231_v6 = vld [vmem:[%s859_s2 + $0x28] sm:$0xff] }
  0x11   :  { %572 = vmatprep.mubr.msk.f32.mxu0 %vm88_vm0, %v46_v16  ;;  %591 = vmatprep.mubr.msk.f32.mxu1 %vm274_vm1, %v226_v29  ;;  %v230_v5 = vld [vmem:[%s859_s2 + $0x20] sm:$0xff]  ;;  %v232_v7 = vld [vmem:[%s859_s2 + $0x30] sm:$0xff]  ;;  %v233_v8 = vld [vmem:[%s859_s2 + $0x38] sm:$0xff]  ;;  %p668_p3 = por %p667_p2, %p666_p1 }
  0x13   :  { %241 = vperm.xlu1 %660, %v30_v21   ;;  %p669_p4 = pnand %p668_p3, %p662_p0 }
  0x14   :  { %573 = vmatmul.mubr.msk.f32.gmra.mrb[6].mxu0 %vm88_vm0, %v47_v19  ;;  %236 = vperm.xlu0 %659, %v29_v20  }
  0x15   :  { %619 = vmatprep.mubr.msk.f32.mxu0 %vm687_vm2, %v688_v10 }
  0x17   :  { %251 = vperm.xlu1 %660, %v32_v23  }
  0x18   :  { %246 = vperm.xlu0 %659, %v31_v22  }
  0x1b   :  { %261 = vperm.xlu1 %660, %v34_v25  }
  0x1c   :  { %256 = vperm.xlu0 %659, %v33_v24  }
  0x1f   :  { %271 = vperm.xlu1 %660, %v36_v27  }
  0x20   :  { %266 = vperm.xlu0 %659, %v35_v26  }
  0x24   :  { %415 = vperm.xlu0 %659, %v37_v28  }
  0x81   :  { %v61_v31 = vpop.permute.xlu1 %60 }
  0x83   :  { %v51_v30 = vpop.permute.xlu0 %50 }
  0x85   :  { %v66_v33 = vpop.permute.xlu1 %65 }
  0x87   :  { %v56_v32 = vpop.permute.xlu0 %55 }
  0x8a   :  { %v76_v43 = vpop.permute.xlu1 %75 }
  0x8b   :  { %v71_v46 = vpop.permute.xlu0 %70 }
  0x8e   :  { %v86_v55 = vpop.permute.xlu1 %85 }
  0x8f   :  { %v81_v58 = vpop.permute.xlu0 %80 }
  0x92   :  { %v242_v11 = vpop.permute.xlu1 %241 }
  0x93   :  { %v237_v12 = vpop.permute.xlu0 %236 }
  0x96   :  { %v252_v13 = vpop.permute.xlu1 %251 }
  0x97   :  { %v247_v15 = vpop.permute.xlu0 %246 }
  0x9a   :  { %v262_v24 = vpop.permute.xlu1 %261 }
  0x9b   :  { %v257_v27 = vpop.permute.xlu0 %256 }
  0xdb   :  { %v565_v34 = vpop.f32.mrb[0].mxu0 }
  0xdc   :  { %v185_v35 = vadd.f32 %v565_v34, %v56_v32  ;;  %v179_v36 = vpop.f32.mrb[1].mxu0 }
  0xdd   :  { %v180_v37 = vadd.f32 %v179_v36, %v51_v30  ;;  %v272_v36 = vpop.permute.xlu1 %271 }
  0xde   :  { %v219_v38 = vmax.f32 %v185_v35, 0.0 }
  0xdf   :  { %v218_v39 = vmax.f32 %v180_v37, 0.0  ;;  %v568_v40 = vpop.f32.mrb[2].mxu0 }
  0xe0   :  { %v195_v41 = vadd.f32 %v568_v40, %v66_v33  ;;  %v189_v42 = vpop.f32.mrb[3].mxu0 }
  0xe1   :  { %v190_v44 = vadd.f32 %v189_v42, %v61_v31  ;;  %v626_v45 = vpack.c.bf16 %v219_v38, %v218_v39  ;;  %v267_v39 = vpop.permute.xlu0 %266 }
  0xe2   :  { %v221_v47 = vmax.f32 %v195_v41, 0.0 }
  0xe3   :  { %v220_v48 = vmax.f32 %v190_v44, 0.0  ;;  %v571_v49 = vpop.f32.mrb[4].mxu0  ;;  %627 = vmatprep.subr.bf16.mxu1 %v626_v45 }
  0xe4   :  { %v205_v50 = vadd.f32 %v571_v49, %v76_v43  ;;  %v199_v51 = vpop.f32.mrb[5].mxu0  ;;  %629 = vmatpush3.bf16.msra.mxu1 %v626_v45 }
  0xe5   :  { %v630_v52 = vpack.c.bf16 %v221_v47, %v220_v48  ;;  %v200_v53 = vadd.f32 %v199_v51, %v71_v46  ;;  %v412_v47 = vld [vmem:[%s860_s3] sm:$0xf]  ;;  %v416_v48 = vpop.permute.xlu0 %415 }
  0xe6   :  { %v223_v54 = vmax.f32 %v205_v50, 0.0 }
  0xe7   :  { %v222_v56 = vmax.f32 %v200_v53, 0.0  ;;  %v574_v57 = vpop.f32.mrb[6].mxu0  ;;  %631 = vmatprep.subr.bf16.mxu1 %v630_v52 }
  0xe8   :  { %v215_v59 = vadd.f32 %v574_v57, %v86_v55  ;;  %v209_v60 = vpop.f32.mrb[7].mxu0  ;;  %633 = vmatpush3.bf16.msra.mxu1 %v630_v52 }
  0xe9   :  { %v634_v61 = vpack.c.bf16 %v223_v54, %v222_v56  ;;  %v210_v62 = vadd.f32 %v209_v60, %v81_v58 }
  0xea   :  { %v225_v63 = vmax.f32 %v215_v59, 0.0 }
  0xeb   :  { %v224_v0 = vmax.f32 %v210_v62, 0.0  ;;  %635 = vmatprep.subr.bf16.mxu1 %v634_v61 }
  0xec   :  { %637 = vmatpush3.bf16.msra.mxu1 %v634_v61 }
  0xed   :  { %v638_v1 = vpack.c.bf16 %v225_v63, %v224_v0 }
  0xef   :  { %639 = vmatprep.subr.bf16.mxu1 %v638_v1 }
  0xf0   :  { %641 = vmatpush3.bf16.msra.mxu1 %v638_v1 }
  0xf3   :  { %592 = vmatmul.mubr.msk.f32.vlgmr.msra.gmra.mrb[0].mxu1 %vm274_vm1, %v227_v2 }
  0xf4   :  { %594 = vmatprep.mubr.msk.f32.mxu1 %vm274_vm1, %v228_v3 }
  0xf7   :  { %595 = vmatmul.mubr.msk.f32.gmra.mrb[2].mxu1 %vm274_vm1, %v229_v4 }
  0xf8   :  { %597 = vmatprep.mubr.msk.f32.mxu1 %vm274_vm1, %v230_v5 }
  0xfb   :  { %598 = vmatmul.mubr.msk.f32.gmra.mrb[4].mxu1 %vm274_vm1, %v231_v6 }
  0xfc   :  { %600 = vmatprep.mubr.msk.f32.mxu1 %vm274_vm1, %v232_v7 }
  0xff   :  { %601 = vmatmul.mubr.msk.f32.gmra.mrb[6].mxu1 %vm274_vm1, %v233_v8 }
 0x1c6   :  { %v593_v14 = vpop.f32.mrb[0].mxu1 }
 0x1c7   :  { %v371_v16 = vadd.f32 %v593_v14, %v242_v11  ;;  %v365_v17 = vpop.f32.mrb[1].mxu1 }
 0x1c8   :  { %v366_v18 = vadd.f32 %v365_v17, %v237_v12 }
 0x1c9   :  { %v405_v19 = vmax.f32 %v371_v16, 0.0 }
 0x1ca   :  { %v404_v20 = vmax.f32 %v366_v18, 0.0  ;;  %v596_v21 = vpop.f32.mrb[2].mxu1 }
 0x1cb   :  { %v381_v22 = vadd.f32 %v596_v21, %v252_v13  ;;  %v375_v23 = vpop.f32.mrb[3].mxu1 }
 0x1cc   :  { %v643_v25 = vpack.c.bf16 %v405_v19, %v404_v20  ;;  %v376_v26 = vadd.f32 %v375_v23, %v247_v15 }
 0x1cd   :  { %v407_v28 = vmax.f32 %v381_v22, 0.0 }
 0x1ce   :  { %v406_v29 = vmax.f32 %v376_v26, 0.0  ;;  %v599_v30 = vpop.f32.mrb[4].mxu1  ;;  %644 = vmatpush3.bf16.msra.mxu0 %v643_v25 }
 0x1cf   :  { %v391_v31 = vadd.f32 %v599_v30, %v262_v24  ;;  %v385_v32 = vpop.f32.mrb[5].mxu1  ;;  %645 = vmatprep.subr.bf16.mxu0 %v686_v9 }
 0x1d0   :  { %v646_v33 = vpack.c.bf16 %v407_v28, %v406_v29  ;;  %v386_v34 = vadd.f32 %v385_v32, %v257_v27 }
 0x1d1   :  { %v409_v35 = vmax.f32 %v391_v31, 0.0 }
 0x1d2   :  { %v408_v37 = vmax.f32 %v386_v34, 0.0  ;;  %v602_v38 = vpop.f32.mrb[6].mxu1  ;;  %647 = vmatpush3.bf16.msra.mxu0 %v646_v33 }
 0x1d3   :  { %v401_v40 = vadd.f32 %v602_v38, %v272_v36  ;;  %v395_v41 = vpop.f32.mrb[7].mxu1  ;;  %648 = vmatprep.subr.bf16.mxu0 %v686_v9 }
 0x1d4   :  { %v649_v42 = vpack.c.bf16 %v409_v35, %v408_v37  ;;  %v396_v43 = vadd.f32 %v395_v41, %v267_v39 }
 0x1d5   :  { %v411_v44 = vmax.f32 %v401_v40, 0.0 }
 0x1d6   :  { %v410_v45 = vmax.f32 %v396_v43, 0.0  ;;  %650 = vmatpush3.bf16.msra.mxu0 %v649_v42 }
 0x1d7   :  { %651 = vmatprep.subr.bf16.mxu0 %v686_v9 }
 0x1d8   :  { %v652_v46 = vpack.c.bf16 %v411_v44, %v410_v45 }
 0x1da   :  { %653 = vmatpush3.bf16.msra.mxu0 %v652_v46 }
 0x1dd   :  { %620 = vmatmul.mubr.msk.f32.vlgmr.msra.gmra.mrb[8].mxu0 %vm274_vm1, %v412_v47 }
 0x2b0   :  { %v487_v49 = vpop.f32.mrb[8].mxu0 }
 0x2b1   :  { %v488_v50 = vadd.f32 %v487_v49, %v416_v48  ;;  %v621_v51 = vpop.f32.mrb[9].mxu0 }
 0x2b3   :  { %492 = vst.msk [vmem:[#allocation2] sm:$0xf] %vm491_vm3, %v488_v50 }
 0x2b4   :  { %672 = shalt.err (!%p669_p4)
}
 0x2b5   :  { %s673_s12 = scalar_lea.hbm %s862_s5, 64 }
 0x2b6   :  { %p674_p5 = scmp.ne.s32.totalorder %s862_s5, %s673_s12  ;;  %p677_p6 = scmp.lt.u32.totalorder %s673_s12, %s862_s5 }
 0x2b8   :  { %p679_p7 = pnand %p677_p6, %p674_p5 }
 0x2ba   :  { %682 = shalt.err (!%p679_p7)
}
 0x2bb   :  { %502 = dma.vmem_to_hbm [thread:$0]  %s500_s9, 64, %s862_s5, [#allocation3]  }
 0x2bc   :  { %683 = dma.done.wait [#allocation3], 64  }
 0x2bd   :  { %684 = vsyncadd [#allocation3], 4294967232 }
 0x2be   :  { %506 = vsyncpa [#allocation3], 1 }

</bundles_post_ra>
